<compile_context>
chip_gen: v7x
topology: tpu7x:2x2x1
jax: 0.10.0
libtpu: 0.0.40
codegen_flags: <defaults>
</compile_context>

<pallas_src>
import functools

import numpy as np
import jax
import jax.numpy as jnp
from jax.experimental import pallas as pl
from jax.experimental.pallas import tpu as pltpu


_SUBLANES = 8
_LANES = 128
_UNIFORM_W_MAX = 64          # above this the block-diagonal slab is too wasteful
_GENERAL_TK = 1024           # K tile for the large-L fallback


def _round_up(x: int, m: int) -> int:
    return (x + m - 1) // m * m


def _cdiv(a: int, b: int) -> int:
    return (a + b - 1) // b


def _vmem_limit_bytes() -> int:
    """Per-generation scoped-VMEM budget: ~3/4 of physical per-core VMEM
    (≈96 MiB on v5e/v6e, ≈48 MiB on v7x), with a safe fallback."""
    try:
        cap = int(pltpu.get_tpu_info().vmem_capacity_bytes)
    except Exception:
        cap = 64 * 1024 * 1024            # v7x-sized fallback, safe everywhere
    return max(32 * 1024 * 1024, min(3 * cap // 4, 100 * 1024 * 1024))


def _pick_row_tile(n_rows: int, bytes_per_row: int, slab_target: int) -> int:
    """Row tile (multiple of 8, capped at 1024) sized for ~slab_target bytes per
    x block while minimizing ragged-edge waste.  N is never padded in HBM."""
    cap = (slab_target // max(1, bytes_per_row)) // _SUBLANES * _SUBLANES
    cap = max(_SUBLANES, min(1024, cap))
    if n_rows <= cap:
        return n_rows                      # block dim == full array dim (always legal)
    steps = _cdiv(n_rows, cap)
    return min(cap, _round_up(_cdiv(n_rows, steps), _SUBLANES))


# ---------------------------------------------------------------------------
# Kernels.
# ---------------------------------------------------------------------------
def _pool_matmul_kernel(x_ref, s_ref, o_ref, *, scale):
    # x_ref: (tm, K) feature slab, s_ref: (K, tn) pooling weights/mask,
    # o_ref: (tm, tn).  Accumulate in f32 on the MXU; scale on the VPU.
    # Note: default MXU precision already met the 1e-4 test tolerance; plumb
    # lax.Precision.HIGHEST here if bit-tighter f32 averaging is ever required.
    acc = jnp.dot(x_ref[...], s_ref[...], preferred_element_type=jnp.float32)
    o_ref[...] = (acc * scale).astype(o_ref.dtype)


def _pool_matmul_acc_kernel(x_ref, p_ref, o_ref, acc_ref):
    @pl.when(pl.program_id(2) == 0)
    def _():
        acc_ref[...] = jnp.zeros_like(acc_ref)

    acc_ref[...] += jnp.dot(x_ref[...], p_ref[...],
                            preferred_element_type=jnp.float32)

    @pl.when(pl.program_id(2) == pl.num_programs(2) - 1)
    def _():
        o_ref[...] = acc_ref[...].astype(o_ref.dtype)


# ---------------------------------------------------------------------------
# Path 1: uniform windows (L % T == 0) — banded pooling matmul.
# ---------------------------------------------------------------------------
def _pick_uniform_tn(T: int, W: int, itemsize: int, s_cap: int):
    # Widest output tile whose block-diagonal mask slab (tn*W, tn) fits s_cap.
    for cand in (512, 256, 128):
        if T % cand == 0 and cand * cand * W * itemsize <= s_cap:
            return cand
    if T % _LANES == 0 and _LANES * _LANES * W * itemsize <= s_cap:
        return _LANES
    if T <= 1024 and T * T * W * itemsize <= s_cap:
        return T                           # single column tile: zero padding anywhere
    return None                            # fall back to the general path


def _aggregate_uniform(x: jnp.ndarray, T: int) -> jnp.ndarray:
    N, L = x.shape
    W = L // T
    dtype = x.dtype
    itemsize = dtype.itemsize

    vmem_limit = _vmem_limit_bytes()
    s_cap = min(6 * 1024 * 1024, vmem_limit // 8)
    x_slab_target = min(8 * 1024 * 1024, vmem_limit // 6)

    tn = _pick_uniform_tn(T, W, itemsize, s_cap)
    if tn is None:
        return _aggregate_general(x, T)

    bytes_per_row = tn * W * itemsize
    tm = _pick_row_tile(N, bytes_per_row, x_slab_target)
    row_steps = _cdiv(N, tm)
    col_steps = T // tn

    # Block-diagonal 0/1 mask: rows [t*W, (t+1)*W) -> column t.  1/W is applied
    # on the VPU after the dot (exact for bf16 inputs, smallest resident slab).
    rows = np.arange(tn * W)
    s_np = np.zeros((tn * W, tn), dtype=np.float32)
    s_np[rows, rows // W] = 1.0
    s = jnp.asarray(s_np, dtype=dtype)

    kernel = functools.partial(_pool_matmul_kernel, scale=1.0 / float(W))

    # Put the longer axis first so megacore (v7x: 2 TensorCores) splits it.
    if row_steps >= col_steps:
        grid = (row_steps, col_steps)
        x_map = lambda i, j: (i, j)
        o_map = lambda i, j: (i, j)
    else:
        grid = (col_steps, row_steps)
        x_map = lambda j, i: (i, j)
        o_map = lambda j, i: (i, j)
    s_map = lambda *_: (0, 0)              # constant block index -> VMEM-resident

    flops = 2 * N * L * tn
    bytes_accessed = (N * L + tn * W * tn + N * T) * itemsize

    # TODO(synk): on v5e the f32 banded matmul sits near the f32-MXU roofline;
    # callers can pass bf16 features (supported end-to-end here: 0/1 mask is
    # exact in bf16, scaling stays f32) to halve HBM traffic and use the native
    # bf16 MXU path.
    return pl.pallas_call(
        kernel,
        out_shape=jax.ShapeDtypeStruct((N, T), dtype),
        grid=grid,
        in_specs=[
            pl.BlockSpec((tm, tn * W), x_map),
            pl.BlockSpec((tn * W, tn), s_map),
        ],
        out_specs=pl.BlockSpec((tm, tn), o_map),
        compiler_params=pltpu.CompilerParams(
            dimension_semantics=("parallel", "parallel"),
            vmem_limit_bytes=vmem_limit,
        ),
        cost_estimate=pl.CostEstimate(
            flops=flops, transcendentals=0, bytes_accessed=bytes_accessed),
    )(x, s)


# ---------------------------------------------------------------------------
# Path 2: general adaptive windows (possibly overlapping by one element).
# ---------------------------------------------------------------------------
def _build_pool_matrix(L: int, T: int, L_rows: int, T_cols: int) -> np.ndarray:
    """Exact adaptive_avg_pool1d weights (windows may overlap by one element)."""
    idx = np.arange(T)
    starts = (idx * L) // T
    ends = -((-(idx + 1) * L) // T)        # ceil((i+1)*L/T)
    p = np.zeros((L_rows, T_cols), dtype=np.float32)
    for i in range(T):
        p[starts[i]:ends[i], i] = 1.0 / float(ends[i] - starts[i])
    return p


def _aggregate_general(x: jnp.ndarray, T: int) -> jnp.ndarray:
    N, L = x.shape
    dtype = x.dtype
    itemsize = dtype.itemsize

    vmem_limit = _vmem_limit_bytes()
    x_slab_target = min(8 * 1024 * 1024, vmem_limit // 6)
    p_block_cap = min(6 * 1024 * 1024, vmem_limit // 8)

    tn = _LANES
    T_pad = _round_up(T, tn)

    if L * tn * itemsize <= p_block_cap:
        # 2a: moderate L — single K block covering the full feature length.
        # No input padding/copy, no accumulator, both grid axes parallel.
        tm = _pick_row_tile(N, L * itemsize, x_slab_target)
        row_steps = _cdiv(N, tm)
        col_steps = T_pad // tn
        p = jnp.asarray(_build_pool_matrix(L, T, L, T_pad), dtype=dtype)
        kernel = functools.partial(_pool_matmul_kernel, scale=1.0)
        out = pl.pallas_call(
            kernel,
            out_shape=jax.ShapeDtypeStruct((N, T_pad), dtype),
            grid=(row_steps, col_steps),
            in_specs=[
                pl.BlockSpec((tm, L), lambda i, j: (i, 0)),
                pl.BlockSpec((L, tn), lambda i, j: (0, j)),
            ],
            out_specs=pl.BlockSpec((tm, tn), lambda i, j: (i, j)),
            compiler_params=pltpu.CompilerParams(
                dimension_semantics=("parallel", "parallel"),
                vmem_limit_bytes=vmem_limit,
            ),
            cost_estimate=pl.CostEstimate(
                flops=2 * N * L * T_pad, transcendentals=0,
                bytes_accessed=(N * L + L * T_pad * row_steps + N * T_pad) * itemsize),
        )(x, p)
        return out[:, :T]

    # 2b: large L — K-tiled matmul with f32 VMEM accumulator.  x is zero-padded
    # along L only (never along N) so the ragged tail cannot feed garbage into
    # valid output columns.
    tn = 256 if T_pad % 256 == 0 else _LANES   # fill the 256-wide MXU when possible
    tk = _GENERAL_TK
    L_pad = _round_up(L, tk)
    tm = _pick_row_tile(N, tk * itemsize, x_slab_target)
    row_steps = _cdiv(N, tm)
    col_steps = T_pad // tn
    k_steps = L_pad // tk

    x_p = x if L_pad == L else jnp.pad(x, ((0, 0), (0, L_pad - L)))
    p = jnp.asarray(_build_pool_matrix(L, T, L_pad, T_pad), dtype=dtype)

    out = pl.pallas_call(
        _pool_matmul_acc_kernel,
        out_shape=jax.ShapeDtypeStruct((N, T_pad), dtype),
        grid=(row_steps, col_steps, k_steps),
        in_specs=[
            pl.BlockSpec((tm, tk), lambda i, j, k: (i, k)),
            pl.BlockSpec((tk, tn), lambda i, j, k: (k, j)),
        ],
        out_specs=pl.BlockSpec((tm, tn), lambda i, j, k: (i, j)),
        scratch_shapes=[pltpu.VMEM((tm, tn), jnp.float32)],
        compiler_params=pltpu.CompilerParams(
            dimension_semantics=("parallel", "parallel", "arbitrary"),
            vmem_limit_bytes=vmem_limit,
        ),
        cost_estimate=pl.CostEstimate(
            flops=2 * N * L_pad * T_pad, transcendentals=0,
            bytes_accessed=(N * L_pad * col_steps + L_pad * T_pad * row_steps
                            + N * T_pad) * itemsize),
    )(x_p, p)
    return out[:, :T]


# ---------------------------------------------------------------------------
# Public entry point (matches Aggregator.forward semantics).
# ---------------------------------------------------------------------------
def aggregator_forward(features: jnp.ndarray, target_dim: int) -> jnp.ndarray:
    """features: (N, ...) -> (N, target_dim), exact adaptive_avg_pool1d."""
    N = features.shape[0]
    x = features.reshape(N, -1)            # same row-major flattening as torch .reshape
    L = x.shape[1]
    if L % target_dim == 0 and (L // target_dim) <= _UNIFORM_W_MAX:
        return _aggregate_uniform(x, target_dim)
    return _aggregate_general(x, target_dim)


def _reference(features: jnp.ndarray, target_dim: int) -> np.ndarray:
    """Pure-numpy reference of torch adaptive_avg_pool1d semantics."""
    N = features.shape[0]
    x = np.asarray(features, dtype=np.float64).reshape(N, -1)
    L = x.shape[1]
    p = _build_pool_matrix(L, target_dim, L, target_dim).astype(np.float64)
    return x @ p


if __name__ == "__main__":
    key = jax.random.PRNGKey(0)

    # Shapes consistent with the module: batch=2, channels=4, spatial=16,
    # Aggregator(target_dim=32).  L = 4*16*16 = 1024 -> uniform banded path.
    B, C, H, W = 2, 4, 16, 16
    target_dim = 32
    x = jax.random.normal(key, (B, C, H, W), dtype=jnp.float32)

    out = jax.block_until_ready(aggregator_forward(x, target_dim))
    assert out.shape == (B, target_dim)
    np.testing.assert_allclose(np.asarray(out), _reference(x, target_dim),
                               rtol=1e-4, atol=1e-5)

    # Second case exercising the general (overlapping-window) path: L = 105.
    x2 = jax.random.normal(jax.random.PRNGKey(0), (2, 3, 5, 7), dtype=jnp.float32)
    out2 = jax.block_until_ready(aggregator_forward(x2, target_dim))
    assert out2.shape == (2, target_dim)
    np.testing.assert_allclose(np.asarray(out2), _reference(x2, target_dim),
                               rtol=1e-4, atol=1e-5)

    print("KERNEL_OK")
</pallas_src>

<mosaic_0001>
module attributes {stable_mosaic.version = 11 : i64} {
  func.func @_pool_matmul_kernel(%arg0: i32, %arg1: i32, %arg2: memref<2x1024xf32, #tpu.memory_space<vmem>>, %arg3: memref<1024x32xf32, #tpu.memory_space<vmem>>, %arg4: memref<2x32xf32, #tpu.memory_space<vmem>>) attributes {dimension_semantics = [#tpu.dimension_semantics<parallel>, #tpu.dimension_semantics<parallel>], iteration_bounds = array<i64: 1, 1>, scalar_prefetch = 0 : i64, scratch_operands = 0 : i64, tpu.core_type = #tpu.core_type<tc>, window_params = [{transform_indices = @transform_0, window_bounds = array<i64: 2, 1024>}, {pipeline_mode = #tpu.pipeline_mode<synchronous>, transform_indices = @transform_1, window_bounds = array<i64: 1024, 32>}, {transform_indices = @transform_2, window_bounds = array<i64: 2, 32>}]} {
    %c0 = arith.constant 0 : index
    %c0_0 = arith.constant 0 : index
    %0 = vector.load %arg2[%c0, %c0_0] : memref<2x1024xf32, #tpu.memory_space<vmem>>, vector<2x1024xf32>
    %c0_1 = arith.constant 0 : index
    %c0_2 = arith.constant 0 : index
    %1 = vector.load %arg3[%c0_1, %c0_2] : memref<1024x32xf32, #tpu.memory_space<vmem>>, vector<1024x32xf32>
    %cst = arith.constant dense<0.000000e+00> : vector<2x32xf32>
    %2 = tpu.matmul %0, %1, %cst {dimension_numbers = #tpu.dot_dimension_numbers<[1], [0], [0], [1], [0, 0, 1, 1], [], []>} : vector<2x1024xf32>, vector<1024x32xf32>, vector<2x32xf32> -> vector<2x32xf32>
    %cst_3 = arith.constant 3.125000e-02 : f32
    %3 = vector.broadcast %cst_3 : f32 to vector<2x32xf32>
    %4 = arith.mulf %2, %3 : vector<2x32xf32>
    %c0_4 = arith.constant 0 : index
    %c0_5 = arith.constant 0 : index
    %5 = vector.load %arg4[%c0_4, %c0_5] : memref<2x32xf32, #tpu.memory_space<vmem>>, vector<2x32xf32>
    tpu.vector_store %arg4[%c0_4, %c0_5], %4 {strides = array<i32>} : memref<2x32xf32, #tpu.memory_space<vmem>>, vector<2x32xf32>,
    return
  }
  func.func @transform_0(%arg0: i32, %arg1: i32) -> (i32, i32) {
    %c0_i32 = arith.constant 0 : i32
    return %arg0, %arg1 : i32, i32
  }
  func.func @transform_1(%arg0: i32, %arg1: i32) -> (i32, i32) {
    %c0_i32 = arith.constant 0 : i32
    %c0_i32_0 = arith.constant 0 : i32
    %c0_i32_1 = arith.constant 0 : i32
    return %c0_i32, %c0_i32_0 : i32, i32
  }
  func.func @transform_2(%arg0: i32, %arg1: i32) -> (i32, i32) {
    %c0_i32 = arith.constant 0 : i32
    return %arg0, %arg1 : i32, i32
  }
}

</mosaic_0001>

<bundles_post_ra>
// kernel: tpu_custom_call.1
= control target key start
LH: loop header
LB: loop body
LE: loop exit
PB: predicated region body
PF: predicated region fallthrough
CT: control target
= control target key end

     0   :  { %v779_v47 = vmov 1983009808   ;;  %v148_v49 = vlaneseq  ;;  %s1209_s0 = inlined_call_operand.vmem [shape: f32[2,1024], index: 0, kind: input, shape index: {}]   ;;  %s1210_s1 = inlined_call_operand.vmem [shape: f32[1024,32], index: 1, kind: input, shape index: {}]   ;;  %s1211_s2 = inlined_call_operand.hbm [shape: f32[2,32], index: 2, kind: output, shape index: {}]  }
   0x1   :  { %v30_v0 = vld [vmem:[%s1210_s1 + $0x80] sm:$0xff]  ;;  %v31_v1 = vld [vmem:[%s1210_s1 + $0x88] sm:$0xff]  ;;  %v32_v11 = vld [vmem:[%s1210_s1 + $0x90] sm:$0xff]  ;;  %v146_v48 = vunpack.c.l.s4 %v779_v47 }
   0x2   :  { %v62_v2 = vld [vmem:[%s1210_s1 + $0x180] sm:$0xff]  ;;  %v623_v3 = vpack.c.bf16 %v31_v1, %v30_v0  ;;  %v63_v4 = vld [vmem:[%s1210_s1 + $0x188] sm:$0xff]  ;;  %v33_v13 = vld [vmem:[%s1210_s1 + $0x98] sm:$0xff]  ;;  %v149_v0 = vshrl.u32 %v148_v49, 7 }
   0x3   :  { %v14_v5 = vld [vmem:[%s1210_s1] sm:$0xff]  ;;  %v15_v6 = vld [vmem:[%s1210_s1 + $0x8] sm:$0xff]  ;;  %v655_v7 = vpack.c.bf16 %v63_v4, %v62_v2  ;;  %v64_v14 = vld [vmem:[%s1210_s1 + $0x190] sm:$0xff]  ;;  %v627_v16 = vpack.c.bf16 %v33_v13, %v32_v11  ;;  %v147_v63 = vunpack.c.0.s8 %v146_v48 }
   0x4   :  { %v625_v8 = vpack.c.bf16 %v15_v6, %v14_v5  ;;  %v46_v9 = vld [vmem:[%s1210_s1 + $0x100] sm:$0xff]  ;;  %v47_v10 = vld [vmem:[%s1210_s1 + $0x108] sm:$0xff]  ;;  %624 = vmatprep.subr.bf16.mxu0 %v623_v3  ;;  %v65_v15 = vld [vmem:[%s1210_s1 + $0x198] sm:$0xff] }
   0x5   :  { %v657_v12 = vpack.c.bf16 %v47_v10, %v46_v9  ;;  %656 = vmatprep.subr.bf16.mxu1 %v655_v7  ;;  %v659_v17 = vpack.c.bf16 %v65_v15, %v64_v14  ;;  %v16_v18 = vld [vmem:[%s1210_s1 + $0x10] sm:$0xff]  ;;  %v17_v19 = vld [vmem:[%s1210_s1 + $0x18] sm:$0xff]  ;;  %v34_v23 = vld [vmem:[%s1210_s1 + $0xa0] sm:$0xff]  ;;  %v946_v13 = vsub.s32 %v147_v63, %v149_v0 }
   0x6   :  { %626 = vmatpush3.bf16.msra.mxu0 %v625_v8  ;;  %v48_v20 = vld [vmem:[%s1210_s1 + $0x110] sm:$0xff]  ;;  %v629_v21 = vpack.c.bf16 %v17_v19, %v16_v18  ;;  %v49_v22 = vld [vmem:[%s1210_s1 + $0x118] sm:$0xff]  ;;  %v35_v24 = vld [vmem:[%s1210_s1 + $0xa8] sm:$0xff] }
   0x7   :  { %658 = vmatpush3.bf16.msra.mxu1 %v657_v12  ;;  %628 = vmatprep.subr.bf16.mxu0 %v627_v16  ;;  %v661_v25 = vpack.c.bf16 %v49_v22, %v48_v20  ;;  %v631_v26 = vpack.c.bf16 %v35_v24, %v34_v23  ;;  %v66_v27 = vld [vmem:[%s1210_s1 + $0x1a0] sm:$0xff]  ;;  %v67_v28 = vld [vmem:[%s1210_s1 + $0x1a8] sm:$0xff]  ;;  %v36_v35 = vld [vmem:[%s1210_s1 + $0xb0] sm:$0xff] }
   0x8   :  { %660 = vmatprep.subr.bf16.mxu1 %v659_v17  ;;  %v18_v29 = vld [vmem:[%s1210_s1 + $0x20] sm:$0xff]  ;;  %v663_v30 = vpack.c.bf16 %v67_v28, %v66_v27  ;;  %v19_v31 = vld [vmem:[%s1210_s1 + $0x28] sm:$0xff]  ;;  %v37_v36 = vld [vmem:[%s1210_s1 + $0xb8] sm:$0xff] }
   0x9   :  { %v50_v32 = vld [vmem:[%s1210_s1 + $0x120] sm:$0xff]  ;;  %v51_v33 = vld [vmem:[%s1210_s1 + $0x128] sm:$0xff]  ;;  %v633_v34 = vpack.c.bf16 %v19_v31, %v18_v29  ;;  %v68_v37 = vld [vmem:[%s1210_s1 + $0x1b0] sm:$0xff]  ;;  %v635_v39 = vpack.c.bf16 %v37_v36, %v36_v35 }
   0xa   :  { %630 = vmatpush3.bf16.msra.mxu0 %v629_v21  ;;  %v665_v38 = vpack.c.bf16 %v51_v33, %v50_v32  ;;  %v69_v40 = vld [vmem:[%s1210_s1 + $0x1b8] sm:$0xff]  ;;  %v20_v41 = vld [vmem:[%s1210_s1 + $0x30] sm:$0xff]  ;;  %v38_v46 = vld [vmem:[%s1210_s1 + $0xc0] sm:$0xff] }
   0xb   :  { %662 = vmatpush3.bf16.msra.mxu1 %v661_v25  ;;  %632 = vmatprep.subr.bf16.mxu0 %v631_v26  ;;  %v21_v42 = vld [vmem:[%s1210_s1 + $0x38] sm:$0xff]  ;;  %v667_v43 = vpack.c.bf16 %v69_v40, %v68_v37  ;;  %v52_v44 = vld [vmem:[%s1210_s1 + $0x130] sm:$0xff]  ;;  %v39_v50 = vld [vmem:[%s1210_s1 + $0xc8] sm:$0xff] }
   0xc   :  { %664 = vmatprep.subr.bf16.mxu1 %v663_v30  ;;  %v53_v45 = vld [vmem:[%s1210_s1 + $0x138] sm:$0xff]  ;;  %v70_v51 = vld [vmem:[%s1210_s1 + $0x1c0] sm:$0xff]  ;;  %v71_v52 = vld [vmem:[%s1210_s1 + $0x1c8] sm:$0xff]  ;;  %v637_v53 = vpack.c.bf16 %v21_v42, %v20_v41  ;;  %v639_v55 = vpack.c.bf16 %v39_v50, %v38_v46 }
   0xd   :  { %v669_v54 = vpack.c.bf16 %v53_v45, %v52_v44  ;;  %v22_v56 = vld [vmem:[%s1210_s1 + $0x40] sm:$0xff]  ;;  %v23_v57 = vld [vmem:[%s1210_s1 + $0x48] sm:$0xff]  ;;  %v671_v59 = vpack.c.bf16 %v71_v52, %v70_v51  ;;  %v40_v61 = vld [vmem:[%s1210_s1 + $0xd0] sm:$0xff] }
   0xe   :  { %634 = vmatpush3.bf16.msra.mxu0 %v633_v34  ;;  %v54_v58 = vld [vmem:[%s1210_s1 + $0x140] sm:$0xff]  ;;  %v55_v60 = vld [vmem:[%s1210_s1 + $0x148] sm:$0xff]  ;;  %v41_v62 = vld [vmem:[%s1210_s1 + $0xd8] sm:$0xff]  ;;  %v641_v3 = vpack.c.bf16 %v23_v57, %v22_v56 }
   0xf   :  { %666 = vmatpush3.bf16.msra.mxu1 %v665_v38  ;;  %636 = vmatprep.subr.bf16.mxu0 %v635_v39  ;;  %v72_v1 = vld [vmem:[%s1210_s1 + $0x1d0] sm:$0xff]  ;;  %v73_v2 = vld [vmem:[%s1210_s1 + $0x1d8] sm:$0xff]  ;;  %v673_v4 = vpack.c.bf16 %v55_v60, %v54_v58  ;;  %v643_v5 = vpack.c.bf16 %v41_v62, %v40_v61  ;;  %v42_v11 = vld [vmem:[%s1210_s1 + $0xe0] sm:$0xff] }
  0x10   :  { %668 = vmatprep.subr.bf16.mxu1 %v667_v43  ;;  %v24_v6 = vld [vmem:[%s1210_s1 + $0x50] sm:$0xff]  ;;  %v25_v7 = vld [vmem:[%s1210_s1 + $0x58] sm:$0xff]  ;;  %v675_v9 = vpack.c.bf16 %v73_v2, %v72_v1  ;;  %v43_v12 = vld [vmem:[%s1210_s1 + $0xe8] sm:$0xff] }
  0x11   :  { %v56_v8 = vld [vmem:[%s1210_s1 + $0x150] sm:$0xff]  ;;  %v57_v10 = vld [vmem:[%s1210_s1 + $0x158] sm:$0xff]  ;;  %v74_v14 = vld [vmem:[%s1210_s1 + $0x1e0] sm:$0xff]  ;;  %v645_v16 = vpack.c.bf16 %v25_v7, %v24_v6  ;;  %v647_v19 = vpack.c.bf16 %v43_v12, %v42_v11 }
  0x12   :  { %638 = vmatpush3.bf16.msra.mxu0 %v637_v53  ;;  %v75_v15 = vld [vmem:[%s1210_s1 + $0x1e8] sm:$0xff]  ;;  %v26_v17 = vld [vmem:[%s1210_s1 + $0x60] sm:$0xff]  ;;  %v677_v18 = vpack.c.bf16 %v57_v10, %v56_v8  ;;  %v44_v25 = vld [vmem:[%s1210_s1 + $0xf0] sm:$0xff] }
  0x13   :  { %670 = vmatpush3.bf16.msra.mxu1 %v669_v54  ;;  %640 = vmatprep.subr.bf16.mxu0 %v639_v55  ;;  %v27_v20 = vld [vmem:[%s1210_s1 + $0x68] sm:$0xff]  ;;  %v58_v21 = vld [vmem:[%s1210_s1 + $0x160] sm:$0xff]  ;;  %v679_v23 = vpack.c.bf16 %v75_v15, %v74_v14  ;;  %v45_v26 = vld [vmem:[%s1210_s1 + $0xf8] sm:$0xff] }
  0x14   :  { %672 = vmatprep.subr.bf16.mxu1 %v671_v59  ;;  %v12_v22 = vld [vmem:[%s1209_s0] sm:$0xff]  ;;  %v59_v24 = vld [vmem:[%s1210_s1 + $0x168] sm:$0xff]  ;;  %v76_v29 = vld [vmem:[%s1210_s1 + $0x1f0] sm:$0xff]  ;;  %v649_v31 = vpack.c.bf16 %v27_v20, %v26_v17  ;;  %v651_v35 = vpack.c.bf16 %v45_v26, %v44_v25 }
  0x15   :  { %v151_v27 = vrot.slane %v12_v22, %v946_v13  ;;  %v144_v28 = vcombine.high %v12_v22, %v12_v22  ;;  %v77_v30 = vld [vmem:[%s1210_s1 + $0x1f8] sm:$0xff]  ;;  %v681_v34 = vpack.c.bf16 %v59_v24, %v58_v21  ;;  %v28_v36 = vld [vmem:[%s1210_s1 + $0x70] sm:$0xff]  ;;  %v94_v42 = vld [vmem:[%s1210_s1 + $0x280] sm:$0xff] }
  0x16   :  { %642 = vmatpush3.bf16.msra.mxu0 %v641_v3  ;;  %v29_v37 = vld [vmem:[%s1210_s1 + $0x78] sm:$0xff]  ;;  %v60_v38 = vld [vmem:[%s1210_s1 + $0x170] sm:$0xff]  ;;  %v683_v39 = vpack.c.bf16 %v77_v30, %v76_v29  ;;  %v95_v43 = vld [vmem:[%s1210_s1 + $0x288] sm:$0xff] }
  0x17   :  { %674 = vmatpush3.bf16.msra.mxu1 %v673_v4  ;;  %644 = vmatprep.subr.bf16.mxu0 %v643_v5  ;;  %v159_v32 = vcombine.high %v151_v27, %v151_v27  ;;  %v158_v33 = vrot.slane %v144_v28, %v946_v13  ;;  %v61_v40 = vld [vmem:[%s1210_s1 + $0x178] sm:$0xff]  ;;  %v126_v44 = vld [vmem:[%s1210_s1 + $0x380] sm:$0xff]  ;;  %v127_v45 = vld [vmem:[%s1210_s1 + $0x388] sm:$0xff]  ;;  %v653_v46 = vpack.c.bf16 %v29_v37, %v28_v36 }
  0x18   :  { %676 = vmatprep.subr.bf16.mxu1 %v675_v9  ;;  %v685_v47 = vpack.c.bf16 %v61_v40, %v60_v38  ;;  %v687_v48 = vpack.c.bf16 %v95_v43, %v94_v42  ;;  %v78_v49 = vld [vmem:[%s1210_s1 + $0x200] sm:$0xff]  ;;  %v79_v50 = vld [vmem:[%s1210_s1 + $0x208] sm:$0xff]  ;;  %v719_v52 = vpack.c.bf16 %v127_v45, %v126_v44  ;;  %v96_v54 = vld [vmem:[%s1210_s1 + $0x290] sm:$0xff] }
  0x19   :  { %250 = vmatprep.mubr.f32.mxu0 %v159_v32  ;;  %v160_v41 = vcombine.high %v158_v33, %v158_v33  ;;  %v110_v51 = vld [vmem:[%s1210_s1 + $0x300] sm:$0xff]  ;;  %v111_v53 = vld [vmem:[%s1210_s1 + $0x308] sm:$0xff]  ;;  %v97_v55 = vld [vmem:[%s1210_s1 + $0x298] sm:$0xff]  ;;  %v689_v58 = vpack.c.bf16 %v79_v50, %v78_v49 }
  0x1a   :  { %646 = vmatpush3.bf16.msra.mxu0 %v645_v16  ;;  %v128_v56 = vld [vmem:[%s1210_s1 + $0x390] sm:$0xff]  ;;  %v129_v57 = vld [vmem:[%s1210_s1 + $0x398] sm:$0xff]  ;;  %v721_v59 = vpack.c.bf16 %v111_v53, %v110_v51  ;;  %v691_v60 = vpack.c.bf16 %v97_v55, %v96_v54  ;;  %v98_v2 = vld [vmem:[%s1210_s1 + $0x2a0] sm:$0xff] }
  0x1b   :  { %678 = vmatpush3.bf16.msra.mxu1 %v677_v18  ;;  %648 = vmatprep.subr.bf16.mxu0 %v647_v19  ;;  %v80_v61 = vld [vmem:[%s1210_s1 + $0x210] sm:$0xff]  ;;  %v81_v62 = vld [vmem:[%s1210_s1 + $0x218] sm:$0xff]  ;;  %v723_v0 = vpack.c.bf16 %v129_v57, %v128_v56  ;;  %v99_v3 = vld [vmem:[%s1210_s1 + $0x2a8] sm:$0xff] }
  0x1c   :  { %680 = vmatprep.subr.bf16.mxu1 %v679_v23  ;;  %320 = vmatprep.mubr.f32.mxu1 %v160_v41  ;;  %v112_v63 = vld [vmem:[%s1210_s1 + $0x310] sm:$0xff]  ;;  %v113_v1 = vld [vmem:[%s1210_s1 + $0x318] sm:$0xff]  ;;  %v130_v4 = vld [vmem:[%s1210_s1 + $0x3a0] sm:$0xff]  ;;  %v693_v6 = vpack.c.bf16 %v81_v62, %v80_v61  ;;  %v695_v8 = vpack.c.bf16 %v99_v3, %v98_v2 }
  0x1d   :  { %v131_v5 = vld [vmem:[%s1210_s1 + $0x3a8] sm:$0xff]  ;;  %v725_v7 = vpack.c.bf16 %v113_v1, %v112_v63  ;;  %v82_v9 = vld [vmem:[%s1210_s1 + $0x220] sm:$0xff]  ;;  %v100_v15 = vld [vmem:[%s1210_s1 + $0x2b0] sm:$0xff] }
  0x1e   :  { %650 = vmatpush3.bf16.msra.mxu0 %v649_v31  ;;  %v83_v10 = vld [vmem:[%s1210_s1 + $0x228] sm:$0xff]  ;;  %v114_v11 = vld [vmem:[%s1210_s1 + $0x320] sm:$0xff]  ;;  %v727_v12 = vpack.c.bf16 %v131_v5, %v130_v4  ;;  %v101_v16 = vld [vmem:[%s1210_s1 + $0x2b8] sm:$0xff] }
  0x1f   :  { %682 = vmatpush3.bf16.msra.mxu1 %v681_v34  ;;  %652 = vmatprep.subr.bf16.mxu0 %v651_v35  ;;  %v115_v14 = vld [vmem:[%s1210_s1 + $0x328] sm:$0xff]  ;;  %v132_v17 = vld [vmem:[%s1210_s1 + $0x3b0] sm:$0xff]  ;;  %v133_v18 = vld [vmem:[%s1210_s1 + $0x3b8] sm:$0xff]  ;;  %v697_v19 = vpack.c.bf16 %v83_v10, %v82_v9  ;;  %v699_v22 = vpack.c.bf16 %v101_v16, %v100_v15 }
  0x20   :  { %684 = vmatprep.subr.bf16.mxu1 %v683_v39  ;;  %v84_v20 = vld [vmem:[%s1210_s1 + $0x230] sm:$0xff]  ;;  %v729_v21 = vpack.c.bf16 %v115_v14, %v114_v11  ;;  %v85_v23 = vld [vmem:[%s1210_s1 + $0x238] sm:$0xff]  ;;  %v731_v26 = vpack.c.bf16 %v133_v18, %v132_v17  ;;  %v103_v28 = vld [vmem:[%s1210_s1 + $0x2c8] sm:$0xff] }
  0x21   :  { %v116_v24 = vld [vmem:[%s1210_s1 + $0x330] sm:$0xff]  ;;  %v117_v25 = vld [vmem:[%s1210_s1 + $0x338] sm:$0xff]  ;;  %v134_v29 = vld [vmem:[%s1210_s1 + $0x3c0] sm:$0xff] }
  0x22   :  { %654 = vmatpush3.bf16.msra.mxu0 %v653_v46  ;;  %v135_v30 = vld [vmem:[%s1210_s1 + $0x3c8] sm:$0xff] }
  0x23   :  { %686 = vmatpush3.bf16.msra.mxu1 %v685_v47  ;;  %688 = vmatprep.subr.bf16.mxu0 %v687_v48  ;;  %v13_v31 = vld [vmem:[%s1209_s0 + $0x8] sm:$0xff] }
  0x24   :  { %720 = vmatprep.subr.bf16.mxu1 %v719_v52 }
  0x25   :  { %251 = vmatmul.mubr.f32.vlgmr.msra.gmra.mrb[0].mxu0 %v151_v27  ;;  %v102_v27 = vld [vmem:[%s1210_s1 + $0x2c0] sm:$0xff] }
  0x26   :  { %321 = vmatmul.mubr.f32.vlgmr.msra.gmra.mrb[0].mxu1 %v158_v33  ;;  %690 = vmatpush3.bf16.msra.mxu0 %v689_v58 }
  0x27   :  { %722 = vmatpush3.bf16.msra.mxu1 %v721_v59  ;;  %692 = vmatprep.subr.bf16.mxu0 %v691_v60 }
  0x28   :  { %724 = vmatprep.subr.bf16.mxu1 %v723_v0 }
  0x2a   :  { %694 = vmatpush3.bf16.msra.mxu0 %v693_v6 }
  0x2b   :  { %726 = vmatpush3.bf16.msra.mxu1 %v725_v7  ;;  %696 = vmatprep.subr.bf16.mxu0 %v695_v8 }
  0x2c   :  { %728 = vmatprep.subr.bf16.mxu1 %v727_v12 }
  0x2d   :  { %7 = vsyncpa [#allocation3], 0  ;;  %v701_v32 = vpack.c.bf16 %v85_v23, %v84_v20  ;;  %v1107_v33 = vrot.slane %v13_v31, %v946_v13  ;;  %v161_v34 = vcombine.high %v13_v31, %v13_v31  ;;  %v733_v35 = vpack.c.bf16 %v117_v25, %v116_v24  ;;  %v86_v37 = vld [vmem:[%s1210_s1 + $0x240] sm:$0xff]  ;;  %v87_v38 = vld [vmem:[%s1210_s1 + $0x248] sm:$0xff] }
  0x2e   :  { %698 = vmatpush3.bf16.msra.mxu0 %v697_v19  ;;  %v703_v36 = vpack.c.bf16 %v103_v28, %v102_v27  ;;  %v118_v39 = vld [vmem:[%s1210_s1 + $0x340] sm:$0xff]  ;;  %v735_v40 = vpack.c.bf16 %v135_v30, %v134_v29  ;;  %v119_v41 = vld [vmem:[%s1210_s1 + $0x348] sm:$0xff]  ;;  %v104_v42 = vld [vmem:[%s1210_s1 + $0x2d0] sm:$0xff]  ;;  %v705_v48 = vpack.c.bf16 %v87_v38, %v86_v37  ;;  %vm467_vm0 = vcmask 254976  }
  0x2f   :  { %730 = vmatpush3.bf16.msra.mxu1 %v729_v21  ;;  %700 = vmatprep.subr.bf16.mxu0 %v699_v22  ;;  %v105_v43 = vld [vmem:[%s1210_s1 + $0x2d8] sm:$0xff]  ;;  %v176_v44 = vcombine.high %v1107_v33, %v1107_v33  ;;  %v175_v45 = vrot.slane %v161_v34, %v946_v13  ;;  %v136_v46 = vld [vmem:[%s1210_s1 + $0x3d0] sm:$0xff]  ;;  %v737_v50 = vpack.c.bf16 %v119_v41, %v118_v39  ;;  %v106_v56 = vld [vmem:[%s1210_s1 + $0x2e0] sm:$0xff] }
  0x30   :  { %732 = vmatprep.subr.bf16.mxu1 %v731_v26  ;;  %v137_v47 = vld [vmem:[%s1210_s1 + $0x3d8] sm:$0xff]  ;;  %v707_v51 = vpack.c.bf16 %v105_v43, %v104_v42  ;;  %v88_v13 = vld [vmem:[%s1210_s1 + $0x250] sm:$0xff]  ;;  %v107_v57 = vld [vmem:[%s1210_s1 + $0x2e8] sm:$0xff] }
  0x31   :  { %390 = vmatprep.mubr.f32.mxu0 %v176_v44  ;;  %v177_v49 = vcombine.high %v175_v45, %v175_v45  ;;  %v89_v52 = vld [vmem:[%s1210_s1 + $0x258] sm:$0xff]  ;;  %v120_v53 = vld [vmem:[%s1210_s1 + $0x350] sm:$0xff]  ;;  %v739_v54 = vpack.c.bf16 %v137_v47, %v136_v46  ;;  %v138_v58 = vld [vmem:[%s1210_s1 + $0x3e0] sm:$0xff]  ;;  %v711_v62 = vpack.c.bf16 %v107_v57, %v106_v56 }
  0x32   :  { %702 = vmatpush3.bf16.msra.mxu0 %v701_v32  ;;  %v121_v55 = vld [vmem:[%s1210_s1 + $0x358] sm:$0xff]  ;;  %v139_v59 = vld [vmem:[%s1210_s1 + $0x3e8] sm:$0xff]  ;;  %v709_v60 = vpack.c.bf16 %v89_v52, %v88_v13  ;;  %v90_v63 = vld [vmem:[%s1210_s1 + $0x260] sm:$0xff] }
  0x33   :  { %734 = vmatpush3.bf16.msra.mxu1 %v733_v35  ;;  %704 = vmatprep.subr.bf16.mxu0 %v703_v36  ;;  %v741_v61 = vpack.c.bf16 %v121_v55, %v120_v53  ;;  %v91_v0 = vld [vmem:[%s1210_s1 + $0x268] sm:$0xff]  ;;  %v122_v1 = vld [vmem:[%s1210_s1 + $0x360] sm:$0xff]  ;;  %v743_v2 = vpack.c.bf16 %v139_v59, %v138_v58  ;;  %v108_v4 = vld [vmem:[%s1210_s1 + $0x2f0] sm:$0xff] }
  0x34   :  { %736 = vmatprep.subr.bf16.mxu1 %v735_v40  ;;  %460 = vmatprep.mubr.f32.mxu1 %v177_v49  ;;  %v123_v3 = vld [vmem:[%s1210_s1 + $0x368] sm:$0xff]  ;;  %v109_v5 = vld [vmem:[%s1210_s1 + $0x2f8] sm:$0xff]  ;;  %v140_v6 = vld [vmem:[%s1210_s1 + $0x3f0] sm:$0xff]  ;;  %v713_v8 = vpack.c.bf16 %v91_v0, %v90_v63 }
  0x35   :  { %v141_v7 = vld [vmem:[%s1210_s1 + $0x3f8] sm:$0xff]  ;;  %v745_v9 = vpack.c.bf16 %v123_v3, %v122_v1  ;;  %v715_v10 = vpack.c.bf16 %v109_v5, %v108_v4  ;;  %v92_v11 = vld [vmem:[%s1210_s1 + $0x270] sm:$0xff] }
  0x36   :  { %706 = vmatpush3.bf16.msra.mxu0 %v705_v48  ;;  %v93_v12 = vld [vmem:[%s1210_s1 + $0x278] sm:$0xff]  ;;  %v747_v14 = vpack.c.bf16 %v141_v7, %v140_v6  ;;  %v124_v15 = vld [vmem:[%s1210_s1 + $0x370] sm:$0xff] }
  0x37   :  { %738 = vmatpush3.bf16.msra.mxu1 %v737_v50  ;;  %708 = vmatprep.subr.bf16.mxu0 %v707_v51  ;;  %v125_v16 = vld [vmem:[%s1210_s1 + $0x378] sm:$0xff]  ;;  %v717_v17 = vpack.c.bf16 %v93_v12, %v92_v11  ;;  %s780_s1 = smov [#allocation2]  }
  0x38   :  { %740 = vmatprep.subr.bf16.mxu1 %v739_v54  ;;  %v749_v18 = vpack.c.bf16 %v125_v16, %v124_v15  ;;  %s475_s15 = sshll.u32 %s780_s1, 4  ;;  %s476_s15 = int_to_ptr.vmem [resolvable:$true] %s475_s15 }
  0x39   :  { %s755_s16 = scalar_lea.vmem %s476_s15, 32  ;;  %p760_p1 = scmp.lt.s32.totalorder %s476_s15, %s476_s15 }
  0x3a   :  { %710 = vmatpush3.bf16.msra.mxu0 %v709_v60  ;;  %p756_p0 = scmp.ne.s32.totalorder %s476_s15, %s755_s16  ;;  %p761_p2 = scmp.lt.s32.totalorder %s755_s16, %s755_s16 }
  0x3b   :  { %742 = vmatpush3.bf16.msra.mxu1 %v741_v61  ;;  %712 = vmatprep.subr.bf16.mxu0 %v711_v62 }
  0x3c   :  { %744 = vmatprep.subr.bf16.mxu1 %v743_v2  ;;  %p762_p3 = por %p761_p2, %p760_p1 }
  0x3e   :  { %714 = vmatpush3.bf16.msra.mxu0 %v713_v8  ;;  %p763_p4 = pnand %p762_p3, %p756_p0 }
  0x3f   :  { %746 = vmatpush3.bf16.msra.mxu1 %v745_v9  ;;  %716 = vmatprep.subr.bf16.mxu0 %v715_v10 }
  0x40   :  { %748 = vmatprep.subr.bf16.mxu1 %v747_v14 }
  0x42   :  { %718 = vmatpush3.bf16.msra.mxu0 %v717_v17 }
  0x43   :  { %750 = vmatpush3.bf16.msra.mxu1 %v749_v18 }
  0x45   :  { %391 = vmatmul.mubr.f32.vlgmr.msra.gmra.mrb[2].mxu0 %v1107_v33 }
  0x46   :  { %461 = vmatmul.mubr.f32.vlgmr.msra.gmra.mrb[2].mxu1 %v175_v45 }
  0xf8   :  { %v515_v19 = vpop.f32.mrb[0].mxu0 }
  0xf9   :  { %v550_v20 = vpop.f32.mrb[0].mxu1  ;;  %v516_v21 = vpop.f32.mrb[1].mxu0 }
  0xfa   :  { %v517_v22 = vadd.f32 %v516_v21, %v515_v19  ;;  %v551_v23 = vpop.f32.mrb[1].mxu1 }
  0xfb   :  { %v552_v24 = vadd.f32 %v551_v23, %v550_v20 }
  0xfd   :  { %v323_v25 = vadd.f32 %v552_v24, %v517_v22 }
 0x118   :  { %v585_v26 = vpop.f32.mrb[2].mxu0 }
 0x119   :  { %v586_v27 = vpop.f32.mrb[3].mxu0  ;;  %v620_v28 = vpop.f32.mrb[2].mxu1 }
 0x11a   :  { %v587_v29 = vadd.f32 %v586_v27, %v585_v26  ;;  %v621_v30 = vpop.f32.mrb[3].mxu1 }
 0x11b   :  { %v622_v31 = vadd.f32 %v621_v30, %v620_v28 }
 0x11c   :  { %v393_v32 = vadd.f32 %v587_v29, %v323_v25 }
 0x11e   :  { %v463_v34 = vadd.f32 %v622_v31, %v393_v32 }
 0x120   :  { %v466_v33 = vmul.f32 0.03125, %v463_v34 }
 0x122   :  { %468 = vst.msk [vmem:[#allocation2] sm:$0x3] %vm467_vm0, %v466_v33 }
 0x123   :  { %766 = shalt.err (!%p763_p4)
}
 0x124   :  { %s767_s19 = scalar_lea.hbm %s1211_s2, 32 }
 0x125   :  { %p768_p5 = scmp.ne.s32.totalorder %s1211_s2, %s767_s19  ;;  %p771_p6 = scmp.lt.u32.totalorder %s767_s19, %s1211_s2 }
 0x127   :  { %p773_p7 = pnand %p771_p6, %p768_p5 }
 0x129   :  { %776 = shalt.err (!%p773_p7)
}
 0x12a   :  { %478 = dma.vmem_to_hbm [thread:$0]  %s476_s15, 32, %s1211_s2, [#allocation3]  }
 0x12b   :  { %777 = dma.done.wait [#allocation3], 32  }
 0x12c   :  { %778 = vsyncadd [#allocation3], 4294967264 }
 0x12d   :  { %482 = vsyncpa [#allocation3], 1 }

</bundles_post_ra>
